<compile_context>
chip_gen: v7x
topology: tpu7x:2x2x1
jax: 0.10.0
libtpu: 0.0.40
codegen_flags: <defaults>
</compile_context>

<pallas_src>
import functools
import math

import jax
import jax.numpy as jnp
from jax.experimental import pallas as pl
from jax.experimental.pallas import tpu as pltpu

_SUBLANE = 8
_LANE = 128


def _gelu_exact(x):
    # PyTorch nn.GELU() default = exact erf formulation.
    return 0.5 * x * (1.0 + jax.lax.erf(x * (1.0 / math.sqrt(2.0))))


def grade_head_kernel(x_ref, w_in_ref, b_in_ref, w2_ref, b2_ref,
                      w_out_ref, b_out_ref, out_ref, *, h1, h2):
    x = x_ref[...].astype(jnp.float32)

    # Fused entry matmul for both branches: (TB, F) @ (F, 512 + 256).
    # BatchNorm1d(512) of the grade branch is pre-folded into w_in/b_in.
    y = jnp.dot(x, w_in_ref[...], preferred_element_type=jnp.float32) + b_in_ref[...]
    # Both branches apply GELU right after their entry layer -> do it once.
    y = _gelu_exact(y)
    h = y[:, :h1]          # grade branch   (TB, 512)
    o = y[:, h1:]          # ordinal branch (TB, 256)

    # Grade branch hidden layer; BatchNorm1d(256) folded into w2/b2.
    h = jnp.dot(h, w2_ref[...], preferred_element_type=jnp.float32) + b2_ref[...]
    h = _gelu_exact(h)
    # Dropout(0.4): identity in eval mode.

    # Lane-dense fused output projection into a (TB, 128) slab:
    #   cols [0, num_grades)                -> grade logits
    #   cols [num_grades, 2*num_grades - 1) -> ordinal thresholds
    out = (jnp.dot(h, w_out_ref[:h2, :], preferred_element_type=jnp.float32)
           + jnp.dot(o, w_out_ref[h2:, :], preferred_element_type=jnp.float32)
           + b_out_ref[...])
    out_ref[...] = out.astype(out_ref.dtype)


def _fold_and_fuse_params(p):
    """Fold eval-mode BN into the Linears and fuse/pad weights for the kernel."""
    w1f = p["w1"] * p["s1"]                    # (F, 512)
    b1f = p["b1"] * p["s1"] + p["t1"]          # (1, 512)
    w2f = p["w2"] * p["s2"]                    # (512, 256)
    b2f = p["b2"] * p["s2"] + p["t2"]          # (1, 256)

    w_in = jnp.concatenate([w1f, p["w4"]], axis=1)   # (F, 768)
    b_in = jnp.concatenate([b1f, p["b4"]], axis=1)   # (1, 768)

    h2 = p["w3"].shape[0]       # 256 (grade hidden)
    ho = p["w5"].shape[0]       # 256 (ordinal hidden)
    n_log = p["w3"].shape[1]    # num_grades
    n_ord = p["w5"].shape[1]    # num_grades - 1
    assert n_log + n_ord <= _LANE

    # Block-diagonal, lane-padded (512, 128) output projection + (1, 128) bias.
    w_out = jnp.zeros((h2 + ho, _LANE), jnp.float32)
    w_out = w_out.at[:h2, :n_log].set(p["w3"])
    w_out = w_out.at[h2:, n_log:n_log + n_ord].set(p["w5"])
    b_out = jnp.zeros((1, _LANE), jnp.float32)
    b_out = b_out.at[:, :n_log].set(p["b3"])
    b_out = b_out.at[:, n_log:n_log + n_ord].set(p["b5"])
    return w_in, b_in, w2f, b2f, w_out, b_out


def grade_consistency_head(x, params, num_grades=5, batch_tile=512):
    B, F = x.shape
    w_in, b_in, w2, b2, w_out, b_out = _fold_and_fuse_params(params)
    h1 = 512
    h2 = w2.shape[1]
    pad_n = w_out.shape[1]

    # Batch tile: multiple of 8 sublanes, no bigger than the (padded) batch.
    tb = min(batch_tile, ((B + _SUBLANE - 1) // _SUBLANE) * _SUBLANE)
    bp = pl.cdiv(B, tb) * tb
    xp = x if bp == B else jnp.pad(x, ((0, bp - B), (0, 0)))

    kernel = functools.partial(grade_head_kernel, h1=h1, h2=h2)

    def resident(shape):
        # Whole array stays VMEM-resident across all batch-grid iterations.
        return pl.BlockSpec(shape, lambda i: (0, 0))

    out_slab = pl.pallas_call(
        kernel,
        out_shape=jax.ShapeDtypeStruct((bp, pad_n), jnp.float32),
        grid=(bp // tb,),
        in_specs=[
            pl.BlockSpec((tb, F), lambda i: (i, 0)),   # x: tiled over batch
            resident(w_in.shape),
            resident(b_in.shape),
            resident(w2.shape),
            resident(b2.shape),
            resident(w_out.shape),
            resident(b_out.shape),
        ],
        out_specs=pl.BlockSpec((tb, pad_n), lambda i: (i, 0)),
        compiler_params=pltpu.CompilerParams(
            dimension_semantics=("parallel",)),
    )(xp, w_in, b_in, w2, b2, w_out, b_out)

    logits = out_slab[:B, :num_grades]
    ordinal_thresholds = out_slab[:B, num_grades:2 * num_grades - 1]
    return logits, ordinal_thresholds


def init_params(key, feature_dim, num_grades=5):
    """Deterministic synthetic parameters (shapes from the PyTorch __init__)."""
    ks = jax.random.split(key, 16)
    eps = 1e-5

    def linear(kw, kb, fan_in, fan_out):
        bound = 1.0 / math.sqrt(fan_in)
        # stored as (in, out) so the kernel does x @ W + b
        w = jax.random.uniform(kw, (fan_in, fan_out), jnp.float32, -bound, bound)
        b = jax.random.uniform(kb, (1, fan_out), jnp.float32, -bound, bound)
        return w, b

    def bn(kg, kb, km, kv, n):
        gamma = 1.0 + 0.1 * jax.random.normal(kg, (1, n), jnp.float32)
        beta = 0.1 * jax.random.normal(kb, (1, n), jnp.float32)
        mean = 0.1 * jax.random.normal(km, (1, n), jnp.float32)
        var = jax.nn.softplus(jax.random.normal(kv, (1, n), jnp.float32)) + 0.5
        scale = gamma / jnp.sqrt(var + eps)
        shift = beta - mean * scale
        return scale, shift

    w1, b1 = linear(ks[0], ks[1], feature_dim, 512)
    s1, t1 = bn(ks[2], ks[3], ks[4], ks[5], 512)
    w2, b2 = linear(ks[6], ks[7], 512, 256)
    s2, t2 = bn(ks[8], ks[9], ks[10], ks[11], 256)
    w3, b3 = linear(ks[12], ks[13], 256, num_grades)
    w4, b4 = linear(ks[14], ks[15], feature_dim, 256)
    k5a, k5b = jax.random.split(ks[15])
    w5, b5 = linear(k5a, k5b, 256, num_grades - 1)
    return dict(w1=w1, b1=b1, s1=s1, t1=t1,
                w2=w2, b2=b2, s2=s2, t2=t2,
                w3=w3, b3=b3, w4=w4, b4=b4, w5=w5, b5=b5)


def reference_forward(x, p):
    """Pure-JAX reference matching the PyTorch module in eval mode."""
    h = x @ p["w1"] + p["b1"]
    h = h * p["s1"] + p["t1"]
    h = jax.nn.gelu(h, approximate=False)
    h = h @ p["w2"] + p["b2"]
    h = h * p["s2"] + p["t2"]
    h = jax.nn.gelu(h, approximate=False)
    logits = h @ p["w3"] + p["b3"]

    o = x @ p["w4"] + p["b4"]
    o = jax.nn.gelu(o, approximate=False)
    ords = o @ p["w5"] + p["b5"]
    return logits, ords


if __name__ == "__main__":
    key = jax.random.PRNGKey(0)
    k_x, k_p = jax.random.split(key)

    B, FEATURE_DIM, NUM_GRADES = 8, 32, 5
    x = jax.random.normal(k_x, (B, FEATURE_DIM), dtype=jnp.float32)
    params = init_params(k_p, FEATURE_DIM, NUM_GRADES)

    logits, ordinal_thresholds = grade_consistency_head(x, params, NUM_GRADES)
    jax.block_until_ready((logits, ordinal_thresholds))

    ref_logits, ref_ords = reference_forward(x, params)
    assert logits.shape == (B, NUM_GRADES)
    assert ordinal_thresholds.shape == (B, NUM_GRADES - 1)
    assert jnp.allclose(logits, ref_logits, atol=1e-4, rtol=1e-4)
    assert jnp.allclose(ordinal_thresholds, ref_ords, atol=1e-4, rtol=1e-4)

    print("KERNEL_OK")
</pallas_src>

<mosaic_0001>
module attributes {stable_mosaic.version = 11 : i64} {
  func.func @grade_head_kernel(%arg0: i32, %arg1: memref<8x32xf32, #tpu.memory_space<vmem>>, %arg2: memref<32x768xf32, #tpu.memory_space<vmem>>, %arg3: memref<1x768xf32, #tpu.memory_space<vmem>>, %arg4: memref<512x256xf32, #tpu.memory_space<vmem>>, %arg5: memref<1x256xf32, #tpu.memory_space<vmem>>, %arg6: memref<512x128xf32, #tpu.memory_space<vmem>>, %arg7: memref<1x128xf32, #tpu.memory_space<vmem>>, %arg8: memref<8x128xf32, #tpu.memory_space<vmem>>) attributes {dimension_semantics = [#tpu.dimension_semantics<parallel>], iteration_bounds = array<i64: 1>, scalar_prefetch = 0 : i64, scratch_operands = 0 : i64, tpu.core_type = #tpu.core_type<tc>, window_params = [{transform_indices = @transform_0, window_bounds = array<i64: 8, 32>}, {pipeline_mode = #tpu.pipeline_mode<synchronous>, transform_indices = @transform_1, window_bounds = array<i64: 32, 768>}, {pipeline_mode = #tpu.pipeline_mode<synchronous>, transform_indices = @transform_2, window_bounds = array<i64: 1, 768>}, {pipeline_mode = #tpu.pipeline_mode<synchronous>, transform_indices = @transform_3, window_bounds = array<i64: 512, 256>}, {pipeline_mode = #tpu.pipeline_mode<synchronous>, transform_indices = @transform_4, window_bounds = array<i64: 1, 256>}, {pipeline_mode = #tpu.pipeline_mode<synchronous>, transform_indices = @transform_5, window_bounds = array<i64: 512, 128>}, {pipeline_mode = #tpu.pipeline_mode<synchronous>, transform_indices = @transform_6, window_bounds = array<i64: 1, 128>}, {transform_indices = @transform_7, window_bounds = array<i64: 8, 128>}]} {
    %c0 = arith.constant 0 : index
    %c0_0 = arith.constant 0 : index
    %0 = vector.load %arg1[%c0, %c0_0] : memref<8x32xf32, #tpu.memory_space<vmem>>, vector<8x32xf32>
    %c0_1 = arith.constant 0 : index
    %c0_2 = arith.constant 0 : index
    %1 = vector.load %arg2[%c0_1, %c0_2] : memref<32x768xf32, #tpu.memory_space<vmem>>, vector<32x768xf32>
    %cst = arith.constant dense<0.000000e+00> : vector<8x768xf32>
    %2 = tpu.matmul %0, %1, %cst {dimension_numbers = #tpu.dot_dimension_numbers<[1], [0], [0], [1], [0, 0, 1, 1], [], []>} : vector<8x32xf32>, vector<32x768xf32>, vector<8x768xf32> -> vector<8x768xf32>
    %c0_3 = arith.constant 0 : index
    %c0_4 = arith.constant 0 : index
    %3 = vector.load %arg3[%c0_3, %c0_4] : memref<1x768xf32, #tpu.memory_space<vmem>>, vector<1x768xf32>
    %4 = vector.broadcast %3 : vector<1x768xf32> to vector<8x768xf32>
    %5 = arith.addf %2, %4 : vector<8x768xf32>
    %cst_5 = arith.constant 5.000000e-01 : f32
    %6 = vector.broadcast %cst_5 : f32 to vector<8x768xf32>
    %7 = arith.mulf %6, %5 : vector<8x768xf32>
    %cst_6 = arith.constant 0.707106769 : f32
    %8 = vector.broadcast %cst_6 : f32 to vector<8x768xf32>
    %9 = arith.mulf %5, %8 : vector<8x768xf32>
    %10 = math.erf %9 : vector<8x768xf32>
    %cst_7 = arith.constant 1.000000e+00 : f32
    %11 = vector.broadcast %cst_7 : f32 to vector<8x768xf32>
    %12 = arith.addf %11, %10 : vector<8x768xf32>
    %13 = arith.mulf %7, %12 : vector<8x768xf32>
    %14 = vector.extract_strided_slice %13 {offsets = [0, 0], sizes = [8, 512], strides = [1, 1]} : vector<8x768xf32> to vector<8x512xf32>
    %15 = vector.extract_strided_slice %13 {offsets = [0, 512], sizes = [8, 256], strides = [1, 1]} : vector<8x768xf32> to vector<8x256xf32>
    %c0_8 = arith.constant 0 : index
    %c0_9 = arith.constant 0 : index
    %16 = vector.load %arg4[%c0_8, %c0_9] : memref<512x256xf32, #tpu.memory_space<vmem>>, vector<512x256xf32>
    %cst_10 = arith.constant dense<0.000000e+00> : vector<8x256xf32>
    %17 = tpu.matmul %14, %16, %cst_10 {dimension_numbers = #tpu.dot_dimension_numbers<[1], [0], [0], [1], [0, 0, 1, 1], [], []>} : vector<8x512xf32>, vector<512x256xf32>, vector<8x256xf32> -> vector<8x256xf32>
    %c0_11 = arith.constant 0 : index
    %c0_12 = arith.constant 0 : index
    %18 = vector.load %arg5[%c0_11, %c0_12] : memref<1x256xf32, #tpu.memory_space<vmem>>, vector<1x256xf32>
    %19 = vector.broadcast %18 : vector<1x256xf32> to vector<8x256xf32>
    %20 = arith.addf %17, %19 : vector<8x256xf32>
    %cst_13 = arith.constant 5.000000e-01 : f32
    %21 = vector.broadcast %cst_13 : f32 to vector<8x256xf32>
    %22 = arith.mulf %21, %20 : vector<8x256xf32>
    %cst_14 = arith.constant 0.707106769 : f32
    %23 = vector.broadcast %cst_14 : f32 to vector<8x256xf32>
    %24 = arith.mulf %20, %23 : vector<8x256xf32>
    %25 = math.erf %24 : vector<8x256xf32>
    %cst_15 = arith.constant 1.000000e+00 : f32
    %26 = vector.broadcast %cst_15 : f32 to vector<8x256xf32>
    %27 = arith.addf %26, %25 : vector<8x256xf32>
    %28 = arith.mulf %22, %27 : vector<8x256xf32>
    %c0_16 = arith.constant 0 : index
    %c0_17 = arith.constant 0 : index
    %29 = vector.load %arg6[%c0_16, %c0_17] : memref<512x128xf32, #tpu.memory_space<vmem>>, vector<256x128xf32>
    %cst_18 = arith.constant dense<0.000000e+00> : vector<8x128xf32>
    %30 = tpu.matmul %28, %29, %cst_18 {dimension_numbers = #tpu.dot_dimension_numbers<[1], [0], [0], [1], [0, 0, 1, 1], [], []>} : vector<8x256xf32>, vector<256x128xf32>, vector<8x128xf32> -> vector<8x128xf32>
    %c256 = arith.constant 256 : index
    %c0_19 = arith.constant 0 : index
    %31 = vector.load %arg6[%c256, %c0_19] : memref<512x128xf32, #tpu.memory_space<vmem>>, vector<256x128xf32>
    %cst_20 = arith.constant dense<0.000000e+00> : vector<8x128xf32>
    %32 = tpu.matmul %15, %31, %cst_20 {dimension_numbers = #tpu.dot_dimension_numbers<[1], [0], [0], [1], [0, 0, 1, 1], [], []>} : vector<8x256xf32>, vector<256x128xf32>, vector<8x128xf32> -> vector<8x128xf32>
    %33 = arith.addf %30, %32 : vector<8x128xf32>
    %c0_21 = arith.constant 0 : index
    %c0_22 = arith.constant 0 : index
    %34 = vector.load %arg7[%c0_21, %c0_22] : memref<1x128xf32, #tpu.memory_space<vmem>>, vector<1x128xf32>
    %35 = vector.broadcast %34 : vector<1x128xf32> to vector<8x128xf32>
    %36 = arith.addf %33, %35 : vector<8x128xf32>
    %c0_23 = arith.constant 0 : index
    %c0_24 = arith.constant 0 : index
    %37 = vector.load %arg8[%c0_23, %c0_24] : memref<8x128xf32, #tpu.memory_space<vmem>>, vector<8x128xf32>
    tpu.vector_store %arg8[%c0_23, %c0_24], %36 {strides = array<i32>} : memref<8x128xf32, #tpu.memory_space<vmem>>, vector<8x128xf32>,
    return
  }
  func.func @transform_0(%arg0: i32) -> (i32, i32) {
    %c0_i32 = arith.constant 0 : i32
    %c0_i32_0 = arith.constant 0 : i32
    return %arg0, %c0_i32 : i32, i32
  }
  func.func @transform_1(%arg0: i32) -> (i32, i32) {
    %c0_i32 = arith.constant 0 : i32
    %c0_i32_0 = arith.constant 0 : i32
    %c0_i32_1 = arith.constant 0 : i32
    return %c0_i32, %c0_i32_0 : i32, i32
  }
  func.func @transform_2(%arg0: i32) -> (i32, i32) {
    %c0_i32 = arith.constant 0 : i32
    %c0_i32_0 = arith.constant 0 : i32
    %c0_i32_1 = arith.constant 0 : i32
    return %c0_i32, %c0_i32_0 : i32, i32
  }
  func.func @transform_3(%arg0: i32) -> (i32, i32) {
    %c0_i32 = arith.constant 0 : i32
    %c0_i32_0 = arith.constant 0 : i32
    %c0_i32_1 = arith.constant 0 : i32
    return %c0_i32, %c0_i32_0 : i32, i32
  }
  func.func @transform_4(%arg0: i32) -> (i32, i32) {
    %c0_i32 = arith.constant 0 : i32
    %c0_i32_0 = arith.constant 0 : i32
    %c0_i32_1 = arith.constant 0 : i32
    return %c0_i32, %c0_i32_0 : i32, i32
  }
  func.func @transform_5(%arg0: i32) -> (i32, i32) {
    %c0_i32 = arith.constant 0 : i32
    %c0_i32_0 = arith.constant 0 : i32
    %c0_i32_1 = arith.constant 0 : i32
    return %c0_i32, %c0_i32_0 : i32, i32
  }
  func.func @transform_6(%arg0: i32) -> (i32, i32) {
    %c0_i32 = arith.constant 0 : i32
    %c0_i32_0 = arith.constant 0 : i32
    %c0_i32_1 = arith.constant 0 : i32
    return %c0_i32, %c0_i32_0 : i32, i32
  }
  func.func @transform_7(%arg0: i32) -> (i32, i32) {
    %c0_i32 = arith.constant 0 : i32
    %c0_i32_0 = arith.constant 0 : i32
    return %arg0, %c0_i32 : i32, i32
  }
}

</mosaic_0001>

<bundles_post_ra>
// kernel: tpu_custom_call.1
= control target key start
LH: loop header
LB: loop body
LE: loop exit
PB: predicated region body
PF: predicated region fallthrough
CT: control target
= control target key end

     0   :  { %12 = vsyncpa [#allocation3], 0  ;;  %s1505_s0 = inlined_call_operand.hbm [shape: f32[8,32], index: 0, kind: input, shape index: {}]   ;;  %s1506_s1 = inlined_call_operand.hbm [shape: f32[32,768], index: 1, kind: input, shape index: {}]   ;;  %s1507_s2 = inlined_call_operand.vmem [shape: f32[1,768], index: 2, kind: input, shape index: {}]   ;;  %s1508_s3 = inlined_call_operand.hbm [shape: f32[512,256], index: 3, kind: input, shape index: {}]   ;;  %s1509_s4 = inlined_call_operand.vmem [shape: f32[1,256], index: 4, kind: input, shape index: {}]   ;;  %s1510_s5 = inlined_call_operand.hbm [shape: f32[512,128], index: 5, kind: input, shape index: {}]   ;;  %s1511_s6 = inlined_call_operand.vmem [shape: f32[1,128], index: 6, kind: input, shape index: {}]   ;;  %s1512_s7 = inlined_call_operand.hbm [shape: f32[8,128], index: 7, kind: output, shape index: {}]  }
   0x1   :  { %13 = vsyncpa [#allocation6], 0 }
   0x2   :  { %14 = vsyncpa [#allocation9], 0 }
   0x3   :  { %15 = vsyncpa [#allocation4], 0  ;;  %s1346_s24 = smov [#allocation5]   ;;  %s1228_s28 = scalar_lea.hbm %s1506_s1, 3072 }
   0x4   :  { %s31_s25 = sshll.u32 %s1346_s24, 4  ;;  %p1229_p0 = scmp.ne.s32.totalorder %s1506_s1, %s1228_s28  ;;  %s32_s25 = int_to_ptr.vmem [resolvable:$true] %s31_s25 }
   0x5   :  { %p1232_p1 = scmp.lt.u32.totalorder %s1228_s28, %s1506_s1 }
   0x7   :  { %p1234_p2 = pnand %p1232_p1, %p1229_p0 }
   0x9   :  { %1237 = shalt.err (!%p1234_p2)
}
   0xa   :  { %s1238_s10 = scalar_lea.vmem %s32_s25, 3072  ;;  %p1243_p4 = scmp.lt.s32.totalorder %s32_s25, %s32_s25 }
   0xb   :  { %p1239_p3 = scmp.ne.s32.totalorder %s32_s25, %s1238_s10  ;;  %p1244_p5 = scmp.lt.s32.totalorder %s1238_s10, %s1238_s10 }
   0xd   :  { %p1245_p6 = por %p1244_p5, %p1243_p4 }
   0xf   :  { %p1246_p7 = pnand %p1245_p6, %p1239_p3 }
  0x11   :  { %1249 = shalt.err (!%p1246_p7)
}
  0x12   :  { %s1347_s11 = smov 768   ;;  %s1348_s12 = smov 48  }
  0x13   :  { %37 = dma.hbm_to_vmem [thread:$0]  %s1506_s1, 3072, %s32_s25, [#allocation6], %s1347_s11, %s1347_s11, %s1348_s12  }
  0x14   :  { %s1349_s15 = smov [#allocation2]   ;;  %s1350_s17 = smov [#allocation7]  }
  0x15   :  { %s22_s16 = sshll.u32 %s1349_s15, 4  ;;  %s45_s18 = sshll.u32 %s1350_s17, 4  ;;  %s23_s16 = int_to_ptr.vmem [resolvable:$true] %s22_s16  ;;  %s46_s18 = int_to_ptr.vmem [resolvable:$true] %s45_s18 }
  0x16   :  { %s1250_s21 = scalar_lea.hbm %s1505_s0, 128 }
  0x17   :  { %p1251_p8 = scmp.ne.s32.totalorder %s1505_s0, %s1250_s21  ;;  %p1254_p9 = scmp.lt.u32.totalorder %s1250_s21, %s1505_s0 }
  0x19   :  { %p1256_p10 = pnand %p1254_p9, %p1251_p8 }
  0x1b   :  { %1259 = shalt.err (!%p1256_p10)
}
  0x1c   :  { %s1260_s1 = scalar_lea.vmem %s23_s16, 128  ;;  %p1265_p12 = scmp.lt.s32.totalorder %s23_s16, %s23_s16 }
  0x1d   :  { %p1261_p11 = scmp.ne.s32.totalorder %s23_s16, %s1260_s1  ;;  %p1266_p13 = scmp.lt.s32.totalorder %s1260_s1, %s1260_s1 }
  0x1f   :  { %p1267_p0 = por %p1266_p13, %p1265_p12 }
  0x21   :  { %p1268_p1 = pnand %p1267_p0, %p1261_p11 }
  0x23   :  { %1271 = shalt.err (!%p1268_p1)
}
  0x24   :  { %25 = dma.hbm_to_vmem [thread:$0]  %s1505_s0, 128, %s23_s16, [#allocation3]  }
  0x25   :  { %s1272_s30 = scalar_lea.hbm %s1508_s3, 16384 }
  0x26   :  { %p1273_p2 = scmp.ne.s32.totalorder %s1508_s3, %s1272_s30  ;;  %p1276_p3 = scmp.lt.u32.totalorder %s1272_s30, %s1508_s3 }
  0x28   :  { %p1278_p4 = pnand %p1276_p3, %p1273_p2 }
  0x2a   :  { %1281 = shalt.err (!%p1278_p4)
}
  0x2b   :  { %s1282_s12 = scalar_lea.vmem %s46_s18, 16384  ;;  %p1287_p6 = scmp.lt.s32.totalorder %s46_s18, %s46_s18 }
  0x2c   :  { %p1283_p5 = scmp.ne.s32.totalorder %s46_s18, %s1282_s12  ;;  %p1288_p7 = scmp.lt.s32.totalorder %s1282_s12, %s1282_s12 }
  0x2e   :  { %p1289_p8 = por %p1288_p7, %p1287_p6 }
  0x30   :  { %p1290_p9 = pnand %p1289_p8, %p1283_p5 }
  0x32   :  { %1293 = shalt.err (!%p1290_p9)
}
  0x33   :  { %s1351_s0 = smov 256   ;;  %s1352_s13 = smov 16  }
  0x34   :  { %51 = dma.hbm_to_vmem [thread:$0]  %s1508_s3, 16384, %s46_s18, [#allocation6], %s1351_s0, %s1351_s0, %s1352_s13  }
  0x35   :  { %s1353_s16 = smov [#allocation8]   ;;  %s1294_s21 = scalar_lea.hbm %s1510_s5, 8192 }
  0x36   :  { %s59_s17 = sshll.u32 %s1353_s16, 4  ;;  %p1295_p10 = scmp.ne.s32.totalorder %s1510_s5, %s1294_s21  ;;  %s60_s17 = int_to_ptr.vmem [resolvable:$true] %s59_s17 }
  0x37   :  { %p1298_p11 = scmp.lt.u32.totalorder %s1294_s21, %s1510_s5 }
  0x39   :  { %p1300_p12 = pnand %p1298_p11, %p1295_p10 }
  0x3b   :  { %1303 = shalt.err (!%p1300_p12)
}
  0x3c   :  { %s1304_s1 = scalar_lea.vmem %s60_s17, 8192  ;;  %p1309_p0 = scmp.lt.s32.totalorder %s60_s17, %s60_s17 }
  0x3d   :  { %p1305_p13 = scmp.ne.s32.totalorder %s60_s17, %s1304_s1  ;;  %p1310_p1 = scmp.lt.s32.totalorder %s1304_s1, %s1304_s1 }
  0x3f   :  { %p1311_p2 = por %p1310_p1, %p1309_p0 }
  0x41   :  { %p1312_p3 = pnand %p1311_p2, %p1305_p13 }
  0x43   :  { %1315 = shalt.err (!%p1312_p3)
}
  0x44   :  { %s1354_s3 = smov 128   ;;  %s1355_s18 = smov 8  }
  0x45   :  { %65 = dma.hbm_to_vmem [thread:$0]  %s1510_s5, 8192, %s60_s17, [#allocation9], %s1354_s3, %s1354_s3, %s1355_s18  }
  0x46   :  { %1338 = dma.done.wait [#allocation3], 128  }
  0x47   :  { %1339 = vsyncadd [#allocation3], 4294967168 }
  0x48   :  { %1340 = dma.done.wait [#allocation6], 19456  }
  0x49   :  { %1341 = vsyncadd [#allocation6], 4294947840 }
  0x4a   :  { %1342 = dma.done.wait [#allocation9], 8192  }
  0x4b   :  { %1343 = vsyncadd [#allocation9], 4294959104  ;;  %v1356_v0 = vmov 0.0   ;;  %v82_v1 = vld [vmem:[#allocation5 + $0x8] sm:$0xff]  ;;  %v88_v2 = vld [vmem:[#allocation5 + $0x38] sm:$0xff]  ;;  %vm137_vm0 = vcmask 261120  }
  0x4c   :  { %205 = vmatprep.mubr.f32.mxu0 %v1356_v0  ;;  %v81_v3 = vld [vmem:[#allocation5] sm:$0xff]  ;;  %v980_v4 = vpack.c.bf16 %v88_v2, %v82_v1  ;;  %v87_v5 = vld [vmem:[#allocation5 + $0x30] sm:$0xff]  ;;  %v94_v6 = vld [vmem:[#allocation5 + $0x68] sm:$0xff]  ;;  %s1357_s8 = smov [#allocation10]  }
  0x4d   :  { %v100_v7 = vld [vmem:[#allocation5 + $0x98] sm:$0xff]  ;;  %v982_v8 = vpack.c.bf16 %v87_v5, %v81_v3  ;;  %v93_v10 = vld [vmem:[#allocation5 + $0x60] sm:$0xff]  ;;  %v99_v11 = vld [vmem:[#allocation5 + $0x90] sm:$0xff]  ;;  %s895_s9 = sshll.u32 %s1357_s8, 4  ;;  %s896_s9 = int_to_ptr.vmem [resolvable:$true] %s895_s9 }
  0x4e   :  { %v984_v9 = vpack.c.bf16 %v100_v7, %v94_v6  ;;  %981 = vmatprep.subr.bf16.mxu0 %v980_v4  ;;  %v84_v12 = vld [vmem:[#allocation5 + $0x18] sm:$0xff]  ;;  %v90_v13 = vld [vmem:[#allocation5 + $0x48] sm:$0xff]  ;;  %v986_v14 = vpack.c.bf16 %v99_v11, %v93_v10  ;;  %v83_v15 = vld [vmem:[#allocation5 + $0x10] sm:$0xff]  ;;  %s1316_s10 = scalar_lea.vmem %s896_s9, 128  ;;  %p1321_p5 = scmp.lt.s32.totalorder %s896_s9, %s896_s9 }
  0x4f   :  { %983 = vmatpush1.bf16.msra.mxu0 %v982_v8  ;;  %v89_v16 = vld [vmem:[#allocation5 + $0x40] sm:$0xff]  ;;  %v988_v17 = vpack.c.bf16 %v90_v13, %v84_v12  ;;  %v96_v18 = vld [vmem:[#allocation5 + $0x78] sm:$0xff]  ;;  %v102_v19 = vld [vmem:[#allocation5 + $0xa8] sm:$0xff]  ;;  %p1317_p4 = scmp.ne.s32.totalorder %s896_s9, %s1316_s10  ;;  %p1322_p6 = scmp.lt.s32.totalorder %s1316_s10, %s1316_s10 }
  0x50   :  { %985 = vmatprep.subr.bf16.mxu0 %v984_v9  ;;  %v385_v20 = vld [vmem:[#allocation7 + $0x8] sm:$0xff]  ;;  %v1447_v21 = vld [vmem:[#allocation2] sm:$0xff]  ;;  %v384_v23 = vld [vmem:[#allocation7] sm:$0xff]  ;;  %v990_v30 = vpack.c.bf16 %v89_v16, %v83_v15  ;;  %v992_v35 = vpack.c.bf16 %v102_v19, %v96_v18 }
  0x51   :  { %v387_v22 = vld [vmem:[#allocation7 + $0x18] sm:$0xff]  ;;  %v386_v24 = vld [vmem:[#allocation7 + $0x10] sm:$0xff]  ;;  %v389_v27 = vld [vmem:[#allocation7 + $0x28] sm:$0xff]  ;;  %p1323_p7 = por %p1322_p6, %p1321_p5 }
  0x52   :  { %v1004_v25 = vpack.c.bf16 %v387_v22, %v385_v20  ;;  %v1006_v26 = vpack.c.bf16 %v386_v24, %v384_v23  ;;  %v391_v28 = vld [vmem:[#allocation7 + $0x38] sm:$0xff]  ;;  %v388_v29 = vld [vmem:[#allocation7 + $0x20] sm:$0xff]  ;;  %v390_v32 = vld [vmem:[#allocation7 + $0x30] sm:$0xff] }
  0x53   :  { %987 = vmatpush1.bf16.msra.mxu0 %v986_v14  ;;  %v1008_v31 = vpack.c.bf16 %v391_v28, %v389_v27  ;;  %v393_v33 = vld [vmem:[#allocation7 + $0x48] sm:$0xff]  ;;  %v395_v34 = vld [vmem:[#allocation7 + $0x58] sm:$0xff]  ;;  %v95_v36 = vld [vmem:[#allocation5 + $0x70] sm:$0xff]  ;;  %v1010_v38 = vpack.c.bf16 %v390_v32, %v388_v29  ;;  %p1324_p8 = pnand %p1323_p7, %p1317_p4 }
  0x54   :  { %989 = vmatprep.subr.bf16.mxu0 %v988_v17  ;;  %v101_v37 = vld [vmem:[#allocation5 + $0xa0] sm:$0xff]  ;;  %1005 = vmatprep.subr.bf16.mxu1 %v1004_v25  ;;  %v1012_v39 = vpack.c.bf16 %v395_v34, %v393_v33  ;;  %v394_v41 = vld [vmem:[#allocation7 + $0x50] sm:$0xff]  ;;  %v397_v43 = vld [vmem:[#allocation7 + $0x68] sm:$0xff] }
  0x55   :  { %1007 = vmatpush1.bf16.msra.mxu1 %v1006_v26  ;;  %v392_v40 = vld [vmem:[#allocation7 + $0x40] sm:$0xff]  ;;  %v994_v42 = vpack.c.bf16 %v101_v37, %v95_v36  ;;  %v399_v44 = vld [vmem:[#allocation7 + $0x78] sm:$0xff]  ;;  %v398_v48 = vld [vmem:[#allocation7 + $0x70] sm:$0xff] }
  0x56   :  { %906 = vmatmul.mubr.msk.f32.vlgmr.msra.gmra.mrb[0].mxu0 %vm137_vm0, %v1447_v21  ;;  %1009 = vmatprep.subr.bf16.mxu1 %v1008_v31  ;;  %v1014_v45 = vpack.c.bf16 %v394_v41, %v392_v40  ;;  %v1016_v46 = vpack.c.bf16 %v399_v44, %v397_v43  ;;  %v396_v47 = vld [vmem:[#allocation7 + $0x60] sm:$0xff]  ;;  %v401_v49 = vld [vmem:[#allocation7 + $0x88] sm:$0xff]  ;;  %v403_v50 = vld [vmem:[#allocation7 + $0x98] sm:$0xff] }
  0x57   :  { %991 = vmatpush1.bf16.msra.mxu0 %v990_v30  ;;  %276 = vmatprep.mubr.f32.mxu0 %v1356_v0  ;;  %v1018_v51 = vpack.c.bf16 %v398_v48, %v396_v47  ;;  %v1020_v52 = vpack.c.bf16 %v403_v50, %v401_v49  ;;  %v400_v53 = vld [vmem:[#allocation7 + $0x80] sm:$0xff]  ;;  %v402_v54 = vld [vmem:[#allocation7 + $0x90] sm:$0xff]  ;;  %v405_v55 = vld [vmem:[#allocation7 + $0xa8] sm:$0xff] }
  0x58   :  { %993 = vmatprep.subr.bf16.mxu0 %v992_v35  ;;  %v407_v56 = vld [vmem:[#allocation7 + $0xb8] sm:$0xff]  ;;  %v1022_v57 = vpack.c.bf16 %v402_v54, %v400_v53  ;;  %v404_v59 = vld [vmem:[#allocation7 + $0xa0] sm:$0xff]  ;;  %v406_v60 = vld [vmem:[#allocation7 + $0xb0] sm:$0xff] }
  0x59   :  { %1011 = vmatpush1.bf16.msra.mxu1 %v1010_v38  ;;  %v1024_v58 = vpack.c.bf16 %v407_v56, %v405_v55  ;;  %v409_v61 = vld [vmem:[#allocation7 + $0xc8] sm:$0xff]  ;;  %v411_v62 = vld [vmem:[#allocation7 + $0xd8] sm:$0xff]  ;;  %v1026_v63 = vpack.c.bf16 %v406_v60, %v404_v59  ;;  %v408_v2 = vld [vmem:[#allocation7 + $0xc0] sm:$0xff] }
  0x5a   :  { %1013 = vmatprep.subr.bf16.mxu1 %v1012_v39  ;;  %v1028_v1 = vpack.c.bf16 %v411_v62, %v409_v61  ;;  %v410_v3 = vld [vmem:[#allocation7 + $0xd0] sm:$0xff]  ;;  %v413_v4 = vld [vmem:[#allocation7 + $0xe8] sm:$0xff]  ;;  %v415_v5 = vld [vmem:[#allocation7 + $0xf8] sm:$0xff] }
  0x5b   :  { %995 = vmatpush1.bf16.msra.mxu0 %v994_v42  ;;  %v1030_v6 = vpack.c.bf16 %v410_v3, %v408_v2  ;;  %v412_v7 = vld [vmem:[#allocation7 + $0xe0] sm:$0xff]  ;;  %v414_v8 = vld [vmem:[#allocation7 + $0xf0] sm:$0xff]  ;;  %v417_v9 = vld [vmem:[#allocation7 + $0x108] sm:$0xff] }
  0x5c   :  { %v419_v10 = vld [vmem:[#allocation7 + $0x118] sm:$0xff]  ;;  %v1034_v11 = vpack.c.bf16 %v414_v8, %v412_v7  ;;  %v416_v13 = vld [vmem:[#allocation7 + $0x100] sm:$0xff]  ;;  %v418_v14 = vld [vmem:[#allocation7 + $0x110] sm:$0xff] }
  0x5d   :  { %1015 = vmatpush1.bf16.msra.mxu1 %v1014_v45  ;;  %v1036_v12 = vpack.c.bf16 %v419_v10, %v417_v9  ;;  %v421_v15 = vld [vmem:[#allocation7 + $0x128] sm:$0xff]  ;;  %v423_v16 = vld [vmem:[#allocation7 + $0x138] sm:$0xff]  ;;  %v1038_v17 = vpack.c.bf16 %v418_v14, %v416_v13  ;;  %v420_v19 = vld [vmem:[#allocation7 + $0x120] sm:$0xff] }
  0x5e   :  { %907 = vmatmul.mubr.msk.f32.vlgmr.msra.gmra.mrb[2].mxu0 %vm137_vm0, %v1447_v21  ;;  %1017 = vmatprep.subr.bf16.mxu1 %v1016_v46  ;;  %v1040_v18 = vpack.c.bf16 %v423_v16, %v421_v15  ;;  %v422_v20 = vld [vmem:[#allocation7 + $0x130] sm:$0xff]  ;;  %v425_v22 = vld [vmem:[#allocation7 + $0x148] sm:$0xff]  ;;  %v427_v23 = vld [vmem:[#allocation7 + $0x158] sm:$0xff] }
  0x5f   :  { %347 = vmatprep.mubr.f32.mxu0 %v1356_v0  ;;  %v1032_v0 = vpack.c.bf16 %v415_v5, %v413_v4  ;;  %v1042_v24 = vpack.c.bf16 %v422_v20, %v420_v19  ;;  %v1044_v25 = vpack.c.bf16 %v427_v23, %v425_v22  ;;  %v424_v26 = vld [vmem:[#allocation7 + $0x140] sm:$0xff]  ;;  %v426_v27 = vld [vmem:[#allocation7 + $0x150] sm:$0xff]  ;;  %v429_v29 = vld [vmem:[#allocation7 + $0x168] sm:$0xff] }
  0x60   :  { %v1046_v28 = vpack.c.bf16 %v426_v27, %v424_v26  ;;  %v431_v30 = vld [vmem:[#allocation7 + $0x178] sm:$0xff]  ;;  %v428_v32 = vld [vmem:[#allocation7 + $0x160] sm:$0xff]  ;;  %v430_v33 = vld [vmem:[#allocation7 + $0x170] sm:$0xff] }
  0x61   :  { %1019 = vmatpush1.bf16.msra.mxu1 %v1018_v51  ;;  %v1048_v31 = vpack.c.bf16 %v431_v30, %v429_v29  ;;  %v1050_v34 = vpack.c.bf16 %v430_v33, %v428_v32  ;;  %v433_v35 = vld [vmem:[#allocation7 + $0x188] sm:$0xff]  ;;  %v435_v36 = vld [vmem:[#allocation7 + $0x198] sm:$0xff]  ;;  %v432_v38 = vld [vmem:[#allocation7 + $0x180] sm:$0xff] }
  0x62   :  { %1021 = vmatprep.subr.bf16.mxu1 %v1020_v52  ;;  %v1052_v37 = vpack.c.bf16 %v435_v36, %v433_v35  ;;  %v434_v39 = vld [vmem:[#allocation7 + $0x190] sm:$0xff]  ;;  %v437_v41 = vld [vmem:[#allocation7 + $0x1a8] sm:$0xff]  ;;  %v439_v42 = vld [vmem:[#allocation7 + $0x1b8] sm:$0xff] }
  0x63   :  { %v1054_v40 = vpack.c.bf16 %v434_v39, %v432_v38  ;;  %v1056_v43 = vpack.c.bf16 %v439_v42, %v437_v41  ;;  %v436_v44 = vld [vmem:[#allocation7 + $0x1a0] sm:$0xff]  ;;  %v438_v45 = vld [vmem:[#allocation7 + $0x1b0] sm:$0xff]  ;;  %v441_v47 = vld [vmem:[#allocation7 + $0x1c8] sm:$0xff] }
  0x64   :  { %v1058_v46 = vpack.c.bf16 %v438_v45, %v436_v44  ;;  %v443_v48 = vld [vmem:[#allocation7 + $0x1d8] sm:$0xff]  ;;  %v440_v50 = vld [vmem:[#allocation7 + $0x1c0] sm:$0xff]  ;;  %v442_v51 = vld [vmem:[#allocation7 + $0x1d0] sm:$0xff] }
  0x65   :  { %1023 = vmatpush1.bf16.msra.mxu1 %v1022_v57  ;;  %v1060_v49 = vpack.c.bf16 %v443_v48, %v441_v47  ;;  %v1062_v52 = vpack.c.bf16 %v442_v51, %v440_v50  ;;  %v445_v53 = vld [vmem:[#allocation7 + $0x1e8] sm:$0xff]  ;;  %v447_v54 = vld [vmem:[#allocation7 + $0x1f8] sm:$0xff]  ;;  %v444_v56 = vld [vmem:[#allocation7 + $0x1e0] sm:$0xff] }
  0x66   :  { %1025 = vmatprep.subr.bf16.mxu1 %v1024_v58  ;;  %v1064_v55 = vpack.c.bf16 %v447_v54, %v445_v53  ;;  %v446_v57 = vld [vmem:[#allocation7 + $0x1f0] sm:$0xff]  ;;  %v449_v59 = vld [vmem:[#allocation7 + $0x208] sm:$0xff]  ;;  %v451_v60 = vld [vmem:[#allocation7 + $0x218] sm:$0xff] }
  0x67   :  { %v1066_v58 = vpack.c.bf16 %v446_v57, %v444_v56  ;;  %v1068_v61 = vpack.c.bf16 %v451_v60, %v449_v59  ;;  %v86_v62 = vld [vmem:[#allocation5 + $0x28] sm:$0xff]  ;;  %v85_v2 = vld [vmem:[#allocation5 + $0x20] sm:$0xff]  ;;  %v91_v3 = vld [vmem:[#allocation5 + $0x50] sm:$0xff] }
  0x68   :  { %v998_v4 = vpack.c.bf16 %v91_v3, %v85_v2  ;;  %v98_v5 = vld [vmem:[#allocation5 + $0x88] sm:$0xff]  ;;  %v97_v7 = vld [vmem:[#allocation5 + $0x80] sm:$0xff]  ;;  %v103_v8 = vld [vmem:[#allocation5 + $0xb0] sm:$0xff] }
  0x69   :  { %1027 = vmatpush1.bf16.msra.mxu1 %v1026_v63  ;;  %v92_v63 = vld [vmem:[#allocation5 + $0x58] sm:$0xff]  ;;  %v1002_v9 = vpack.c.bf16 %v103_v8, %v97_v7  ;;  %v724_v10 = vld [vmem:[#allocation8 + $0x180] sm:$0xff]  ;;  %v709_v14 = vld [vmem:[#allocation8 + $0x108] sm:$0xff] }
  0x6a   :  { %1029 = vmatprep.subr.bf16.mxu1 %v1028_v1  ;;  %v996_v1 = vpack.c.bf16 %v92_v63, %v86_v62  ;;  %v726_v15 = vld [vmem:[#allocation8 + $0x190] sm:$0xff]  ;;  %v727_v16 = vld [vmem:[#allocation8 + $0x198] sm:$0xff]  ;;  %v728_v22 = vld [vmem:[#allocation8 + $0x1a0] sm:$0xff] }
  0x6b   :  { %v710_v19 = vld [vmem:[#allocation8 + $0x110] sm:$0xff]  ;;  %v711_v20 = vld [vmem:[#allocation8 + $0x118] sm:$0xff]  ;;  %v729_v23 = vld [vmem:[#allocation8 + $0x1a8] sm:$0xff] }
  0x6c   :  { %997 = vmatprep.subr.bf16.mxu0 %v996_v1  ;;  %v712_v26 = vld [vmem:[#allocation8 + $0x120] sm:$0xff]  ;;  %v730_v47 = vld [vmem:[#allocation8 + $0x1b0] sm:$0xff]  ;;  %v731_v48 = vld [vmem:[#allocation8 + $0x1b8] sm:$0xff] }
  0x6d   :  { %1031 = vmatpush1.bf16.msra.mxu1 %v1030_v6  ;;  %999 = vmatpush1.bf16.msra.mxu0 %v998_v4  ;;  %v104_v6 = vld [vmem:[#allocation5 + $0xb8] sm:$0xff]  ;;  %v714_v50 = vld [vmem:[#allocation8 + $0x130] sm:$0xff]  ;;  %v733_v54 = vld [vmem:[#allocation8 + $0x1c8] sm:$0xff] }
  0x6e   :  { %1033 = vmatprep.subr.bf16.mxu1 %v1032_v0  ;;  %v1000_v0 = vpack.c.bf16 %v104_v6, %v98_v5  ;;  %v715_v51 = vld [vmem:[#allocation8 + $0x138] sm:$0xff]  ;;  %v717_v56 = vld [vmem:[#allocation8 + $0x148] sm:$0xff]  ;;  %v734_v59 = vld [vmem:[#allocation8 + $0x1d0] sm:$0xff] }
  0x6f   :  { %v1146_v53 = vpack.c.bf16 %v715_v51, %v714_v50  ;;  %v735_v60 = vld [vmem:[#allocation8 + $0x1d8] sm:$0xff]  ;;  %v448_v63 = vld [vmem:[#allocation7 + $0x200] sm:$0xff]  ;;  %v450_v1 = vld [vmem:[#allocation7 + $0x210] sm:$0xff] }
  0x70   :  { %1001 = vmatprep.subr.bf16.mxu0 %v1000_v0  ;;  %v453_v2 = vld [vmem:[#allocation7 + $0x228] sm:$0xff]  ;;  %v455_v6 = vld [vmem:[#allocation7 + $0x238] sm:$0xff]  ;;  %v1152_v0 = vpack.c.bf16 %v735_v60, %v734_v59  ;;  %v718_v7 = vld [vmem:[#allocation8 + $0x150] sm:$0xff] }
  0x71   :  { %1035 = vmatpush1.bf16.msra.mxu1 %v1034_v11  ;;  %1003 = vmatpush1.bf16.msra.mxu0 %v1002_v9  ;;  %v725_v11 = vld [vmem:[#allocation8 + $0x188] sm:$0xff]  ;;  %v719_v8 = vld [vmem:[#allocation8 + $0x158] sm:$0xff]  ;;  %v462_v50 = vld [vmem:[#allocation7 + $0x270] sm:$0xff] }
  0x72   :  { %1037 = vmatprep.subr.bf16.mxu1 %v1036_v12  ;;  %v708_v12 = vld [vmem:[#allocation8 + $0x100] sm:$0xff]  ;;  %v1132_v13 = vpack.c.bf16 %v725_v11, %v724_v10  ;;  %v737_v11 = vld [vmem:[#allocation8 + $0x1e8] sm:$0xff]  ;;  %v471_v60 = vld [vmem:[#allocation7 + $0x2b8] sm:$0xff] }
  0x73   :  { %v736_v10 = vld [vmem:[#allocation8 + $0x1e0] sm:$0xff]  ;;  %v469_v59 = vld [vmem:[#allocation7 + $0x2a8] sm:$0xff] }
  0x74   :  { %908 = vmatmul.mubr.msk.f32.vlgmr.msra.gmra.mrb[4].mxu0 %vm137_vm0, %v1447_v21  ;;  %1133 = vmatprep.subr.bf16.mxu0 %v1132_v13  ;;  %v713_v21 = vld [vmem:[#allocation8 + $0x128] sm:$0xff]  ;;  %v1070_v13 = vpack.c.bf16 %v450_v1, %v448_v63  ;;  %v468_v63 = vld [vmem:[#allocation7 + $0x2a0] sm:$0xff]  ;;  %v470_v1 = vld [vmem:[#allocation7 + $0x2b0] sm:$0xff] }
  0x75   :  { %1039 = vmatpush1.bf16.msra.mxu1 %v1038_v17  ;;  %v1134_v17 = vpack.c.bf16 %v709_v14, %v708_v12  ;;  %v1142_v27 = vpack.c.bf16 %v713_v21, %v712_v26  ;;  %v739_v26 = vld [vmem:[#allocation8 + $0x1f8] sm:$0xff] }
  0x76   :  { %1041 = vmatprep.subr.bf16.mxu1 %v1040_v18  ;;  %v1136_v18 = vpack.c.bf16 %v727_v16, %v726_v15  ;;  %v1072_v15 = vpack.c.bf16 %v455_v6, %v453_v2  ;;  %v452_v16 = vld [vmem:[#allocation7 + $0x220] sm:$0xff]  ;;  %v473_v2 = vld [vmem:[#allocation7 + $0x2c8] sm:$0xff] }
  0x77   :  { %1135 = vmatpush3.bf16.msra.mxu0 %v1134_v17  ;;  %v454_v17 = vld [vmem:[#allocation7 + $0x230] sm:$0xff]  ;;  %v472_v6 = vld [vmem:[#allocation7 + $0x2c0] sm:$0xff] }
  0x78   :  { %1137 = vmatprep.subr.bf16.mxu0 %v1136_v18  ;;  %v457_v18 = vld [vmem:[#allocation7 + $0x248] sm:$0xff]  ;;  %v1074_v21 = vpack.c.bf16 %v454_v17, %v452_v16  ;;  %v480_v17 = vld [vmem:[#allocation7 + $0x300] sm:$0xff] }
  0x79   :  { %1043 = vmatpush1.bf16.msra.mxu1 %v1042_v24  ;;  %v1138_v24 = vpack.c.bf16 %v711_v20, %v710_v19  ;;  %v1154_v19 = vpack.c.bf16 %v719_v8, %v718_v7  ;;  %v459_v20 = vld [vmem:[#allocation7 + $0x258] sm:$0xff]  ;;  %v477_v7 = vld [vmem:[#allocation7 + $0x2e8] sm:$0xff] }
  0x7a   :  { %1045 = vmatprep.subr.bf16.mxu1 %v1044_v25  ;;  %v1140_v25 = vpack.c.bf16 %v729_v23, %v728_v22  ;;  %v1156_v22 = vpack.c.bf16 %v737_v11, %v736_v10  ;;  %v720_v23 = vld [vmem:[#allocation8 + $0x160] sm:$0xff]  ;;  %v479_v8 = vld [vmem:[#allocation7 + $0x2f8] sm:$0xff] }
  0x7b   :  { %1139 = vmatpush3.bf16.msra.mxu0 %v1138_v24  ;;  %v721_v24 = vld [vmem:[#allocation8 + $0x168] sm:$0xff]  ;;  %v1096_v10 = vpack.c.bf16 %v479_v8, %v477_v7  ;;  %v476_v11 = vld [vmem:[#allocation7 + $0x2e0] sm:$0xff] }
  0x7c   :  { %1141 = vmatprep.subr.bf16.mxu0 %v1140_v25  ;;  %v738_v25 = vld [vmem:[#allocation8 + $0x1f0] sm:$0xff] }
  0x7d   :  { %1047 = vmatpush1.bf16.msra.mxu1 %v1046_v28  ;;  %v107_v28 = vlaneseq }
  0x7e   :  { %1049 = vmatprep.subr.bf16.mxu1 %v1048_v31  ;;  %v1463_v31 = vld [vmem:[%s1507_s2] sm:$0x3f] }
  0x7f   :  { %1143 = vmatpush3.bf16.msra.mxu0 %v1142_v27  ;;  %v1457_v29 = vshrl.u32 %v107_v28, 7 }
  0x81   :  { %1051 = vmatpush1.bf16.msra.mxu1 %v1050_v34  ;;  %v109_v30 = vsub.s32 0, %v1457_v29  ;;  %v113_v32 = vsub.s32 1, %v1457_v29  ;;  %v121_v39 = vsub.s32 3, %v1457_v29 }
  0x82   :  { %1053 = vmatprep.subr.bf16.mxu1 %v1052_v37 }
  0x83   :  { %v110_v33 = vrot.slane %v1463_v31, %v109_v30  ;;  %v114_v34 = vrot.slane %v1463_v31, %v113_v32  ;;  %v122_v42 = vrot.slane %v1463_v31, %v121_v39 }
  0x85   :  { %1055 = vmatpush1.bf16.msra.mxu1 %v1054_v40 }
  0x86   :  { %1057 = vmatprep.subr.bf16.mxu1 %v1056_v43 }
  0x89   :  { %1059 = vmatpush1.bf16.msra.mxu1 %v1058_v46 }
  0x8a   :  { %1061 = vmatprep.subr.bf16.mxu1 %v1060_v49  ;;  %v1144_v49 = vpack.c.bf16 %v731_v48, %v730_v47 }
  0x8c   :  { %1145 = vmatprep.subr.bf16.mxu0 %v1144_v49  ;;  %v460_v49 = vld [vmem:[#allocation7 + $0x260] sm:$0xff] }
  0x8d   :  { %1063 = vmatpush1.bf16.msra.mxu1 %v1062_v52  ;;  %v732_v52 = vld [vmem:[#allocation8 + $0x1c0] sm:$0xff]  ;;  %1147 = vmatpush3.bf16.msra.mxu0 %v1146_v53  ;;  %v467_v53 = vld [vmem:[#allocation7 + $0x298] sm:$0xff] }
  0x8e   :  { %1065 = vmatprep.subr.bf16.mxu1 %v1064_v55  ;;  %v716_v55 = vld [vmem:[#allocation8 + $0x140] sm:$0xff] }
  0x8f   :  { %v1150_v3 = vpack.c.bf16 %v717_v56, %v716_v55  ;;  %v1082_v55 = vpack.c.bf16 %v462_v50, %v460_v49  ;;  %v496_v50 = vld [vmem:[#allocation7 + $0x380] sm:$0xff] }
  0x91   :  { %1067 = vmatpush1.bf16.msra.mxu1 %v1066_v58  ;;  %v1148_v58 = vpack.c.bf16 %v733_v54, %v732_v52  ;;  %v465_v52 = vld [vmem:[#allocation7 + $0x288] sm:$0xff] }
  0x92   :  { %1069 = vmatprep.subr.bf16.mxu1 %v1068_v61  ;;  %v1084_v56 = vpack.c.bf16 %v467_v53, %v465_v52  ;;  %v501_v52 = vld [vmem:[#allocation7 + $0x3a8] sm:$0xff]  ;;  %v503_v53 = vld [vmem:[#allocation7 + $0x3b8] sm:$0xff] }
  0x93   :  { %1149 = vmatprep.subr.bf16.mxu0 %v1148_v58  ;;  %v466_v58 = vld [vmem:[#allocation7 + $0x290] sm:$0xff] }
  0x94   :  { %1151 = vmatpush3.bf16.msra.mxu0 %v1150_v3  ;;  %v475_v3 = vld [vmem:[#allocation7 + $0x2d8] sm:$0xff] }
  0x95   :  { %1153 = vmatprep.subr.bf16.mxu0 %v1152_v0  ;;  %v474_v0 = vld [vmem:[#allocation7 + $0x2d0] sm:$0xff] }
  0x98   :  { %1155 = vmatpush3.bf16.msra.mxu0 %v1154_v19  ;;  %v485_v19 = vld [vmem:[#allocation7 + $0x328] sm:$0xff] }
  0x99   :  { %1157 = vmatprep.subr.bf16.mxu0 %v1156_v22  ;;  %v117_v22 = vsub.s32 2, %v1457_v29 }
 0x129   :  { %v207_v35 = vpop.f32.mrb[0].mxu0 }
 0x12a   :  { %v208_v36 = vadd.f32 %v207_v35, %v110_v33  ;;  %v209_v37 = vpop.f32.mrb[1].mxu0  ;;  %v1076_v33 = vpack.c.bf16 %v459_v20, %v457_v18  ;;  %v458_v35 = vld [vmem:[#allocation7 + $0x250] sm:$0xff]  ;;  %v487_v20 = vld [vmem:[#allocation7 + $0x338] sm:$0xff] }
 0x12b   :  { %v210_v38 = vadd.f32 %v209_v37, %v114_v34  ;;  %v456_v34 = vld [vmem:[#allocation7 + $0x240] sm:$0xff]  ;;  %v1158_v37 = vpack.c.bf16 %v721_v24, %v720_v23  ;;  %v482_v18 = vld [vmem:[#allocation7 + $0x310] sm:$0xff]  ;;  %v1104_v24 = vpack.c.bf16 %v487_v20, %v485_v19 }
 0x12c   :  { %v360_v40 = vmul.f32 0.70710677, %v208_v36  ;;  %v354_v9 = vmul.f32 0.5, %v208_v36  ;;  %v461_v36 = vld [vmem:[#allocation7 + $0x268] sm:$0xff]  ;;  %v1078_v47 = vpack.c.bf16 %v458_v35, %v456_v34  ;;  %v1102_v23 = vpack.c.bf16 %v482_v18, %v480_v17  ;;  %v488_v35 = vld [vmem:[#allocation7 + $0x340] sm:$0xff] }
 0x12d   :  { %v361_v41 = vmul.f32 0.70710677, %v210_v38  ;;  %v355_v4 = vmul.f32 0.5, %v210_v38  ;;  %v463_v38 = vld [vmem:[#allocation7 + $0x278] sm:$0xff]  ;;  %1159 = vmatpush3.bf16.msra.mxu0 %v1158_v37  ;;  %v493_v37 = vld [vmem:[#allocation7 + $0x368] sm:$0xff] }
 0x12e   :  { %1212 = verf.f32 %v360_v40  ;;  %v1160_v40 = vpack.c.bf16 %v739_v26, %v738_v25  ;;  %v484_v25 = vld [vmem:[#allocation7 + $0x320] sm:$0xff]  ;;  %v486_v26 = vld [vmem:[#allocation7 + $0x330] sm:$0xff] }
 0x12f   :  { %1214 = verf.f32 %v361_v41  ;;  %v722_v41 = vld [vmem:[#allocation8 + $0x170] sm:$0xff] }
 0x130   :  { %1161 = vmatprep.subr.bf16.mxu0 %v1160_v40 }
 0x131   :  { %v1474_v43 = vpop.f32.mrb[2].mxu0 }
 0x132   :  { %v280_v44 = vpop.f32.mrb[3].mxu0 }
 0x133   :  { %v281_v45 = vadd.f32 %v280_v44, %v122_v42  ;;  %v723_v42 = vld [vmem:[#allocation8 + $0x178] sm:$0xff]  ;;  %v692_v44 = vld [vmem:[#allocation8 + $0x80] sm:$0xff] }
 0x134   :  { %v1162_v51 = vpack.c.bf16 %v723_v42, %v722_v41  ;;  %v492_v42 = vld [vmem:[#allocation7 + $0x360] sm:$0xff] }
 0x135   :  { %v363_v46 = vmul.f32 0.70710677, %v281_v45  ;;  %v357_v27 = vmul.f32 0.5, %v281_v45  ;;  %v1080_v45 = vpack.c.bf16 %v463_v38, %v461_v36  ;;  %v490_v36 = vld [vmem:[#allocation7 + $0x350] sm:$0xff]  ;;  %v495_v38 = vld [vmem:[#allocation7 + $0x378] sm:$0xff] }
 0x136   :  { %1163 = vmatpush3.bf16.msra.mxu0 %v1162_v51  ;;  %v1110_v40 = vpack.c.bf16 %v490_v36, %v488_v35  ;;  %v1112_v41 = vpack.c.bf16 %v495_v38, %v493_v37  ;;  %v498_v51 = vld [vmem:[#allocation7 + $0x390] sm:$0xff]  ;;  %v679_v38 = vld [vmem:[#allocation8 + $0x18] sm:$0xff] }
 0x137   :  { %1216 = verf.f32 %v363_v46  ;;  %v693_v46 = vld [vmem:[#allocation8 + $0x88] sm:$0xff]  ;;  %v678_v37 = vld [vmem:[#allocation8 + $0x10] sm:$0xff] }
 0x138   :  { %v1213_v57 = vpop.eup %1212  ;;  %v1164_v54 = vpack.c.bf16 %v693_v46, %v692_v44  ;;  %v494_v44 = vld [vmem:[#allocation7 + $0x370] sm:$0xff]  ;;  %v497_v46 = vld [vmem:[#allocation7 + $0x388] sm:$0xff] }
 0x139   :  { %v1215_v61 = vpop.eup %1214  ;;  %v372_v62 = vadd.f32 1.0, %v1213_v57  ;;  %v464_v57 = vld [vmem:[#allocation7 + $0x280] sm:$0xff] }
 0x13a   :  { %v373_v5 = vadd.f32 1.0, %v1215_v61  ;;  %1165 = vmatprep.subr.bf16.mxu0 %v1164_v54  ;;  %v1086_v61 = vpack.c.bf16 %v466_v58, %v464_v57  ;;  %v1120_v54 = vpack.c.bf16 %v503_v53, %v501_v52  ;;  %v505_v57 = vld [vmem:[#allocation7 + $0x3c8] sm:$0xff]  ;;  %v507_v58 = vld [vmem:[#allocation7 + $0x3d8] sm:$0xff]  ;;  %v700_v53 = vld [vmem:[#allocation8 + $0xc0] sm:$0xff] }
 0x13b   :  { %v378_v14 = vmul.f32 %v372_v62, %v354_v9  ;;  %v1088_v62 = vpack.c.bf16 %v471_v60, %v469_v59  ;;  %v1094_v9 = vpack.c.bf16 %v474_v0, %v472_v6  ;;  %v1124_v60 = vpack.c.bf16 %v507_v58, %v505_v57  ;;  %v702_v58 = vld [vmem:[#allocation8 + $0xd0] sm:$0xff] }
 0x13c   :  { %v379_v12 = vmul.f32 %v373_v5, %v355_v4  ;;  %v1090_v4 = vpack.c.bf16 %v470_v1, %v468_v63  ;;  %v1092_v5 = vpack.c.bf16 %v475_v3, %v473_v2  ;;  %v509_v63 = vld [vmem:[#allocation7 + $0x3e8] sm:$0xff]  ;;  %v511_v1 = vld [vmem:[#allocation7 + $0x3f8] sm:$0xff] }
 0x13d   :  { %v1128_v3 = vpack.c.bf16 %v511_v1, %v509_v63  ;;  %v704_v1 = vld [vmem:[#allocation8 + $0xe0] sm:$0xff] }
 0x13e   :  { %588 = vmatprep.mubr.f32.mxu1 %v379_v12  ;;  %v478_v12 = vld [vmem:[#allocation7 + $0x2f0] sm:$0xff] }
 0x13f   :  { %589 = vmatmul.mubr.f32.vlgmr.msra.gmra.mrb[0].mxu1 %v378_v14  ;;  %v483_v14 = vld [vmem:[#allocation7 + $0x318] sm:$0xff] }
 0x140   :  { %1071 = vmatpush1.bf16.msra.mxu1 %v1070_v13  ;;  %v481_v13 = vld [vmem:[#allocation7 + $0x308] sm:$0xff] }
 0x141   :  { %v1217_v28 = vpop.eup %1216  ;;  %1073 = vmatprep.subr.bf16.mxu1 %v1072_v15  ;;  %v1098_v15 = vpack.c.bf16 %v478_v12, %v476_v11  ;;  %v1100_v16 = vpack.c.bf16 %v483_v14, %v481_v13  ;;  %v129_v11 = vsub.s32 5, %v1457_v29 }
 0x142   :  { %v375_v39 = vadd.f32 1.0, %v1217_v28  ;;  %v118_v28 = vrot.slane %v1463_v31, %v117_v22 }
 0x143   :  { %v130_v13 = vrot.slane %v1463_v31, %v129_v11 }
 0x144   :  { %1075 = vmatpush1.bf16.msra.mxu1 %v1074_v21  ;;  %v381_v48 = vmul.f32 %v375_v39, %v357_v27  ;;  %v489_v21 = vld [vmem:[#allocation7 + $0x348] sm:$0xff]  ;;  %v491_v27 = vld [vmem:[#allocation7 + $0x358] sm:$0xff]  ;;  %v279_v39 = vadd.f32 %v1474_v43, %v118_v28  ;;  %v1118_v43 = vpack.c.bf16 %v498_v51, %v496_v50  ;;  %v694_v28 = vld [vmem:[#allocation8 + $0x90] sm:$0xff] }
 0x145   :  { %1077 = vmatprep.subr.bf16.mxu1 %v1076_v33  ;;  %v1106_v33 = vpack.c.bf16 %v486_v26, %v484_v25  ;;  %v1108_v34 = vpack.c.bf16 %v491_v27, %v489_v21  ;;  %v676_v26 = vld [vmem:[#allocation8] sm:$0xff]  ;;  %v677_v21 = vld [vmem:[#allocation8 + $0x8] sm:$0xff]  ;;  %v682_v50 = vld [vmem:[#allocation8 + $0x30] sm:$0xff] }
 0x146   :  { %659 = vmatprep.mubr.f32.mxu1 %v381_v48  ;;  %v362_v48 = vmul.f32 0.70710677, %v279_v39  ;;  %v356_v7 = vmul.f32 0.5, %v279_v39  ;;  %v1166_v35 = vpack.c.bf16 %v677_v21, %v676_v26  ;;  %v696_v39 = vld [vmem:[#allocation8 + $0xa0] sm:$0xff]  ;;  %v683_v51 = vld [vmem:[#allocation8 + $0x38] sm:$0xff] }
 0x147   :  { %v349_v14 = vpop.f32.mrb[4].mxu0  ;;  %v1178_v52 = vpack.c.bf16 %v683_v51, %v682_v50 }
 0x148   :  { %1079 = vmatpush1.bf16.msra.mxu1 %v1078_v47  ;;  %v499_v47 = vld [vmem:[#allocation7 + $0x398] sm:$0xff]  ;;  %1218 = verf.f32 %v362_v48  ;;  %v698_v48 = vld [vmem:[#allocation8 + $0xb0] sm:$0xff] }
 0x149   :  { %1081 = vmatprep.subr.bf16.mxu1 %v1080_v45  ;;  %v1114_v45 = vpack.c.bf16 %v494_v44, %v492_v42  ;;  %v1116_v49 = vpack.c.bf16 %v499_v47, %v497_v46  ;;  %v680_v44 = vld [vmem:[#allocation8 + $0x20] sm:$0xff]  ;;  %v681_v46 = vld [vmem:[#allocation8 + $0x28] sm:$0xff] }
 0x14a   :  { %v1174_v47 = vpack.c.bf16 %v681_v46, %v680_v44 }
 0x14c   :  { %1083 = vmatpush1.bf16.msra.mxu1 %v1082_v55  ;;  %v500_v55 = vld [vmem:[#allocation7 + $0x3a0] sm:$0xff] }
 0x14d   :  { %1085 = vmatprep.subr.bf16.mxu1 %v1084_v56  ;;  %v502_v56 = vld [vmem:[#allocation7 + $0x3b0] sm:$0xff] }
 0x14e   :  { %v1122_v59 = vpack.c.bf16 %v502_v56, %v500_v55  ;;  %v684_v55 = vld [vmem:[#allocation8 + $0x40] sm:$0xff]  ;;  %v685_v56 = vld [vmem:[#allocation8 + $0x48] sm:$0xff] }
 0x14f   :  { %v1182_v57 = vpack.c.bf16 %v685_v56, %v684_v55 }
 0x150   :  { %1087 = vmatpush1.bf16.msra.mxu1 %v1086_v61  ;;  %v504_v61 = vld [vmem:[#allocation7 + $0x3c0] sm:$0xff] }
 0x151   :  { %1089 = vmatprep.subr.bf16.mxu1 %v1088_v62  ;;  %v506_v62 = vld [vmem:[#allocation7 + $0x3d0] sm:$0xff] }
 0x152   :  { %v1126_v2 = vpack.c.bf16 %v506_v62, %v504_v61  ;;  %v1219_v6 = vpop.eup %1218  ;;  %v686_v61 = vld [vmem:[#allocation8 + $0x50] sm:$0xff]  ;;  %v687_v62 = vld [vmem:[#allocation8 + $0x58] sm:$0xff] }
 0x153   :  { %v374_v8 = vadd.f32 1.0, %v1219_v6  ;;  %v1186_v63 = vpack.c.bf16 %v687_v62, %v686_v61 }
 0x154   :  { %1091 = vmatpush1.bf16.msra.mxu1 %v1090_v4  ;;  %v508_v4 = vld [vmem:[#allocation7 + $0x3e0] sm:$0xff] }
 0x155   :  { %1093 = vmatprep.subr.bf16.mxu1 %v1092_v5  ;;  %v510_v5 = vld [vmem:[#allocation7 + $0x3f0] sm:$0xff] }
 0x156   :  { %v1130_v0 = vpack.c.bf16 %v510_v5, %v508_v4  ;;  %v688_v4 = vld [vmem:[#allocation8 + $0x60] sm:$0xff]  ;;  %v689_v5 = vld [vmem:[#allocation8 + $0x68] sm:$0xff] }
 0x157   :  { %v1190_v6 = vpack.c.bf16 %v689_v5, %v688_v4 }
 0x158   :  { %1095 = vmatpush1.bf16.msra.mxu1 %v1094_v9  ;;  %v380_v9 = vmul.f32 %v374_v8, %v356_v7  ;;  %v707_v7 = vld [vmem:[#allocation8 + $0xf8] sm:$0xff] }
 0x159   :  { %1097 = vmatprep.subr.bf16.mxu1 %v1096_v10  ;;  %v125_v10 = vsub.s32 4, %v1457_v29 }
 0x15b   :  { %v126_v12 = vrot.slane %v1463_v31, %v125_v10  ;;  %v691_v10 = vld [vmem:[#allocation8 + $0x78] sm:$0xff] }
 0x15c   :  { %1099 = vmatpush1.bf16.msra.mxu1 %v1098_v15 }
 0x15d   :  { %1101 = vmatprep.subr.bf16.mxu1 %v1100_v16  ;;  %v350_v15 = vadd.f32 %v349_v14, %v126_v12  ;;  %v351_v16 = vpop.f32.mrb[5].mxu0  ;;  %v512_v12 = vld [vmem:[%s1509_s4] sm:$0x3] }
 0x15e   :  { %v352_v17 = vadd.f32 %v351_v16, %v130_v13  ;;  %v517_v13 = vrot.slane %v512_v12, %v109_v30  ;;  %v521_v14 = vrot.slane %v512_v12, %v113_v32 }
 0x15f   :  { %v364_v18 = vmul.f32 0.70710677, %v350_v15  ;;  %v358_v20 = vmul.f32 0.5, %v350_v15 }
 0x160   :  { %1103 = vmatpush1.bf16.msra.mxu1 %v1102_v23  ;;  %v365_v19 = vmul.f32 0.70710677, %v352_v17  ;;  %v359_v23 = vmul.f32 0.5, %v352_v17 }
 0x161   :  { %1105 = vmatprep.subr.bf16.mxu1 %v1104_v24  ;;  %1220 = verf.f32 %v364_v18 }
 0x162   :  { %1222 = verf.f32 %v365_v19 }
 0x164   :  { %1107 = vmatpush1.bf16.msra.mxu1 %v1106_v33  ;;  %v695_v33 = vld [vmem:[#allocation8 + $0x98] sm:$0xff] }
 0x165   :  { %1109 = vmatprep.subr.bf16.mxu1 %v1108_v34  ;;  %v1168_v36 = vpack.c.bf16 %v695_v33, %v694_v28 }
 0x168   :  { %1111 = vmatpush1.bf16.msra.mxu1 %v1110_v40  ;;  %v697_v40 = vld [vmem:[#allocation8 + $0xa8] sm:$0xff] }
 0x169   :  { %1113 = vmatprep.subr.bf16.mxu1 %v1112_v41  ;;  %v1170_v41 = vpack.c.bf16 %v679_v38, %v678_v37  ;;  %v1172_v42 = vpack.c.bf16 %v697_v40, %v696_v39 }
 0x16b   :  { %v1221_v22 = vpop.eup %1220 }
 0x16c   :  { %1115 = vmatpush1.bf16.msra.mxu1 %v1114_v45  ;;  %v1223_v24 = vpop.eup %1222  ;;  %v376_v25 = vadd.f32 1.0, %v1221_v22  ;;  %v699_v45 = vld [vmem:[#allocation8 + $0xb8] sm:$0xff] }
 0x16d   :  { %1117 = vmatprep.subr.bf16.mxu1 %v1116_v49  ;;  %v377_v27 = vadd.f32 1.0, %v1223_v24  ;;  %v1176_v49 = vpack.c.bf16 %v699_v45, %v698_v48 }
 0x16e   :  { %v382_v34 = vmul.f32 %v376_v25, %v358_v20 }
 0x16f   :  { %v383_v31 = vmul.f32 %v377_v27, %v359_v23 }
 0x170   :  { %1119 = vmatpush1.bf16.msra.mxu1 %v1118_v43  ;;  %v701_v43 = vld [vmem:[#allocation8 + $0xc8] sm:$0xff] }
 0x171   :  { %1121 = vmatprep.subr.bf16.mxu1 %v1120_v54  ;;  %804 = vmatprep.mubr.f32.mxu0 %v383_v31  ;;  %v1180_v54 = vpack.c.bf16 %v701_v43, %v700_v53 }
 0x172   :  { %805 = vmatmul.mubr.f32.vlgmr.msra.gmra.mrb[6].mxu0 %v382_v34 }
 0x173   :  { %1167 = vmatpush3.bf16.msra.mxu0 %v1166_v35  ;;  %v909_v35 = vld [vmem:[%s1511_s6] ss:$0 sm:$0xff] }
 0x174   :  { %1123 = vmatpush1.bf16.msra.mxu1 %v1122_v59  ;;  %1169 = vmatprep.subr.bf16.mxu0 %v1168_v36  ;;  %v703_v59 = vld [vmem:[#allocation8 + $0xd8] sm:$0xff] }
 0x175   :  { %1125 = vmatprep.subr.bf16.mxu1 %v1124_v60  ;;  %v1184_v60 = vpack.c.bf16 %v703_v59, %v702_v58 }
 0x177   :  { %1171 = vmatpush3.bf16.msra.mxu0 %v1170_v41 }
 0x178   :  { %1127 = vmatpush1.bf16.msra.mxu1 %v1126_v2  ;;  %1173 = vmatprep.subr.bf16.mxu0 %v1172_v42  ;;  %v705_v2 = vld [vmem:[#allocation8 + $0xe8] sm:$0xff] }
 0x179   :  { %1129 = vmatprep.subr.bf16.mxu1 %v1128_v3  ;;  %v1188_v3 = vpack.c.bf16 %v705_v2, %v704_v1 }
 0x17b   :  { %1175 = vmatpush3.bf16.msra.mxu0 %v1174_v47 }
 0x17c   :  { %1131 = vmatpush1.bf16.msra.mxu1 %v1130_v0  ;;  %1177 = vmatprep.subr.bf16.mxu0 %v1176_v49  ;;  %v706_v0 = vld [vmem:[#allocation8 + $0xf0] sm:$0xff] }
 0x17d   :  { %v1192_v8 = vpack.c.bf16 %v707_v7, %v706_v0 }
 0x17f   :  { %660 = vmatmul.mubr.f32.vlgmr.msra.gmra.mrb[0].mxu1 %v380_v9  ;;  %1179 = vmatpush3.bf16.msra.mxu0 %v1178_v52  ;;  %v690_v9 = vld [vmem:[#allocation8 + $0x70] sm:$0xff] }
 0x180   :  { %1181 = vmatprep.subr.bf16.mxu0 %v1180_v54  ;;  %v1194_v11 = vpack.c.bf16 %v691_v10, %v690_v9 }
 0x183   :  { %1183 = vmatpush3.bf16.msra.mxu0 %v1182_v57 }
 0x184   :  { %1185 = vmatprep.subr.bf16.mxu0 %v1184_v60 }
 0x187   :  { %1187 = vmatpush3.bf16.msra.mxu0 %v1186_v63 }
 0x188   :  { %1189 = vmatprep.subr.bf16.mxu0 %v1188_v3 }
 0x18b   :  { %1191 = vmatpush3.bf16.msra.mxu0 %v1190_v6 }
 0x18c   :  { %1193 = vmatprep.subr.bf16.mxu0 %v1192_v8 }
 0x18f   :  { %1195 = vmatpush3.bf16.msra.mxu0 %v1194_v11 }
 0x245   :  { %v942_v29 = vpop.f32.mrb[6].mxu0 }
 0x246   :  { %v943_v30 = vpop.f32.mrb[7].mxu0 }
 0x247   :  { %v944_v32 = vadd.f32 %v943_v30, %v942_v29 }
 0x252   :  { %v661_v15 = vpop.f32.mrb[0].mxu1 }
 0x253   :  { %v1196_v16 = vadd.f32 %v661_v15, %v517_v13  ;;  %v663_v17 = vpop.f32.mrb[1].mxu1 }
 0x254   :  { %v1197_v18 = vadd.f32 %v663_v17, %v521_v14 }
 0x255   :  { %v668_v19 = vmul.f32 0.70710677, %v1196_v16  ;;  %v666_v21 = vmul.f32 0.5, %v1196_v16 }
 0x256   :  { %v669_v20 = vmul.f32 0.70710677, %v1197_v18  ;;  %v667_v25 = vmul.f32 0.5, %v1197_v18 }
 0x257   :  { %1224 = verf.f32 %v668_v19 }
 0x258   :  { %1226 = verf.f32 %v669_v20 }
 0x261   :  { %v1225_v22 = vpop.eup %1224 }
 0x262   :  { %v1227_v23 = vpop.eup %1226  ;;  %v672_v24 = vadd.f32 1.0, %v1225_v22 }
 0x263   :  { %v673_v26 = vadd.f32 1.0, %v1227_v23 }
 0x264   :  { %v674_v28 = vmul.f32 %v672_v24, %v666_v21 }
 0x265   :  { %v675_v27 = vmul.f32 %v673_v26, %v667_v25 }
 0x267   :  { %874 = vmatprep.mubr.f32.mxu0 %v675_v27 }
 0x268   :  { %875 = vmatmul.mubr.f32.vlgmr.msra.gmra.mrb[8].mxu0 %v674_v28 }
 0x33b   :  { %v977_v33 = vpop.f32.mrb[8].mxu0 }
 0x33c   :  { %v978_v34 = vpop.f32.mrb[9].mxu0 }
 0x33d   :  { %v979_v31 = vadd.f32 %v978_v34, %v977_v33 }
 0x33f   :  { %v877_v36 = vadd.f32 %v979_v31, %v944_v32 }
 0x341   :  { %v887_v37 = vadd.f32 %v909_v35, %v877_v36 }
 0x343   :  { %888 = vst [vmem:[#allocation10] sm:$0xff] %v887_v37 }
 0x344   :  { %1327 = shalt.err (!%p1324_p8)
}
 0x345   :  { %s1328_s0 = scalar_lea.hbm %s1512_s7, 128 }
 0x346   :  { %p1329_p9 = scmp.ne.s32.totalorder %s1512_s7, %s1328_s0  ;;  %p1332_p10 = scmp.lt.u32.totalorder %s1328_s0, %s1512_s7 }
 0x348   :  { %p1334_p11 = pnand %p1332_p10, %p1329_p9 }
 0x34a   :  { %1337 = shalt.err (!%p1334_p11)
}
 0x34b   :  { %898 = dma.vmem_to_hbm [thread:$0]  %s896_s9, 128, %s1512_s7, [#allocation4]  }
 0x34c   :  { %1344 = dma.done.wait [#allocation4], 128  }
 0x34d   :  { %1345 = vsyncadd [#allocation4], 4294967168 }
 0x34e   :  { %902 = vsyncpa [#allocation3], 1 }
 0x34f   :  { %903 = vsyncpa [#allocation6], 1 }
 0x350   :  { %904 = vsyncpa [#allocation9], 1 }
 0x351   :  { %905 = vsyncpa [#allocation4], 1 }

</bundles_post_ra>
